<compile_context>
chip_gen: v7x
topology: tpu7x:2x2x1
jax: 0.10.0
libtpu: 0.0.40
codegen_flags: <defaults>
</compile_context>

<pallas_src>
import functools

import jax
import jax.numpy as jnp
from jax.experimental import pallas as pl
from jax.experimental.pallas import tpu as pltpu


def _batchnorm1d_kernel(x_ref, w_ref, b_ref, o_ref, *, eps):
    x = x_ref[...].astype(jnp.float32)                    # (N, TC)
    inv_n = 1.0 / float(x.shape[0])

    mean = jnp.sum(x, axis=0, keepdims=True) * inv_n      # (1, TC)
    # Centered (numerically safe), biased variance; the centered tile is consumed
    # inside the reduction rather than held live as a named temporary.
    var = jnp.sum(jnp.square(x - mean), axis=0, keepdims=True) * inv_n  # (1, TC)

    # Fold the affine weight into the normalization scale so per-element work is
    # one subtract + one FMA against (1, TC) broadcasts computed once per tile.
    scale = jax.lax.rsqrt(var + eps) * w_ref[...].astype(jnp.float32)   # (1, TC)
    shift = b_ref[...].astype(jnp.float32)                              # (1, TC)
    o_ref[...] = ((x - mean) * scale + shift).astype(o_ref.dtype)


def _pick_channel_tile(n, c):
    """Lane-dense channel tile sized against the scoped-VMEM budget of this chip."""
    try:
        vmem_bytes = pltpu.get_tpu_info().vmem_capacity_bytes
    except Exception:
        vmem_bytes = 64 * 1024 * 1024       # conservative (v7x-sized) fallback
    budget = vmem_bytes // 8                # stay well under the scoped default
    # Double-buffered x + out tiles: ~ 4 buffers * n * tc * 4 bytes.
    tc = budget // (16 * max(n, 1))
    tc = (tc // 128) * 128
    tc = max(128, tc)                       # keep stores unmasked / lane-dense
    c128 = -(-c // 128) * 128
    # TODO(synk): for N so large that even a 128-lane full-N tile overflows VMEM,
    # add a second ("arbitrary") grid axis over N with sum/sumsq scratch accumulators.
    return min(tc, c128)


def meta_batchnorm1d(x, weight, bias, eps=1e-5, momentum=0.1):
    """Training-mode BatchNorm1d forward.

    x: (N, C) float32; weight, bias: (C,) float32.
    `momentum` only affects the running-stats EMA side effect (not materialized).
    """
    N, C = x.shape
    tc = _pick_channel_tile(N, C)
    c_pad = -(-C // tc) * tc                # pad C so tiles divide exactly

    if c_pad != C:
        # Zero padding is benign: padded columns get mean=0, var=0, weight=0,
        # bias=0 -> output 0, and are sliced off below.
        x = jnp.pad(x, ((0, 0), (0, c_pad - C)))
        weight = jnp.pad(weight, (0, c_pad - C))
        bias = jnp.pad(bias, (0, c_pad - C))

    w2 = weight.reshape(1, c_pad)
    b2 = bias.reshape(1, c_pad)
    grid_c = c_pad // tc

    kernel = functools.partial(_batchnorm1d_kernel, eps=eps)

    out = pl.pallas_call(
        kernel,
        out_shape=jax.ShapeDtypeStruct((N, c_pad), x.dtype),
        grid_spec=pltpu.PrefetchScalarGridSpec(
            num_scalar_prefetch=0,
            grid=(grid_c,),
            in_specs=[
                pl.BlockSpec((N, tc), lambda j: (0, j)),
                pl.BlockSpec((1, tc), lambda j: (0, j)),
                pl.BlockSpec((1, tc), lambda j: (0, j)),
            ],
            out_specs=pl.BlockSpec((N, tc), lambda j: (0, j)),
        ),
        compiler_params=pltpu.CompilerParams(
            dimension_semantics=("parallel",)),
        cost_estimate=pl.CostEstimate(
            flops=8 * N * c_pad,
            transcendentals=c_pad,
            bytes_accessed=8 * N * c_pad),
    )(x, w2, b2)

    if c_pad != C:
        out = out[:, :C]
    return out


def _reference(x, weight, bias, eps=1e-5):
    mean = jnp.mean(x, axis=0, keepdims=True)
    var = jnp.mean((x - mean) ** 2, axis=0, keepdims=True)
    return (x - mean) / jnp.sqrt(var + eps) * weight[None, :] + bias[None, :]


if __name__ == "__main__":
    key = jax.random.PRNGKey(0)
    kx, kw, kb = jax.random.split(key, 3)

    N, C = 8, 32                     # small 2D input (batch, num_features)
    x = jax.random.normal(kx, (N, C), dtype=jnp.float32)
    # Deterministic parameter init (BatchNorm affine params: weight ~ U[0,1), bias = 0).
    weight = jax.random.uniform(kw, (C,), dtype=jnp.float32)
    bias = jnp.zeros((C,), dtype=jnp.float32)

    out = meta_batchnorm1d(x, weight, bias, eps=1e-5)
    out = jax.block_until_ready(out)

    ref = _reference(x, weight, bias, eps=1e-5)
    assert out.shape == (N, C), "shape mismatch"
    assert jnp.allclose(out, ref, atol=1e-5, rtol=1e-5), "mismatch vs reference"

    print("KERNEL_OK")
</pallas_src>

<mosaic_0001>
module attributes {stable_mosaic.version = 11 : i64} {
  func.func @_batchnorm1d_kernel(%arg0: i32, %arg1: memref<8x128xf32, #tpu.memory_space<vmem>>, %arg2: memref<1x128xf32, #tpu.memory_space<vmem>>, %arg3: memref<1x128xf32, #tpu.memory_space<vmem>>, %arg4: memref<8x128xf32, #tpu.memory_space<vmem>>) attributes {dimension_semantics = [#tpu.dimension_semantics<parallel>], iteration_bounds = array<i64: 1>, scalar_prefetch = 0 : i64, scratch_operands = 0 : i64, tpu.core_type = #tpu.core_type<tc>, window_params = [{transform_indices = @transform_0, window_bounds = array<i64: 8, 128>}, {transform_indices = @transform_1, window_bounds = array<i64: 1, 128>}, {transform_indices = @transform_2, window_bounds = array<i64: 1, 128>}, {transform_indices = @transform_3, window_bounds = array<i64: 8, 128>}]} {
    %c0 = arith.constant 0 : index
    %c0_0 = arith.constant 0 : index
    %0 = vector.load %arg1[%c0, %c0_0] : memref<8x128xf32, #tpu.memory_space<vmem>>, vector<8x128xf32>
    %cst = arith.constant dense<0.000000e+00> : vector<128xf32>
    %1 = vector.multi_reduction <add>, %0, %cst [0] : vector<8x128xf32> to vector<128xf32>
    %2 = vector.shape_cast %1 : vector<128xf32> to vector<1x128xf32>
    %cst_1 = arith.constant 1.250000e-01 : f32
    %3 = vector.broadcast %cst_1 : f32 to vector<1x128xf32>
    %4 = arith.mulf %2, %3 : vector<1x128xf32>
    %5 = vector.broadcast %4 : vector<1x128xf32> to vector<8x128xf32>
    %6 = arith.subf %0, %5 : vector<8x128xf32>
    %7 = arith.mulf %6, %6 : vector<8x128xf32>
    %cst_2 = arith.constant dense<0.000000e+00> : vector<128xf32>
    %8 = vector.multi_reduction <add>, %7, %cst_2 [0] : vector<8x128xf32> to vector<128xf32>
    %9 = vector.shape_cast %8 : vector<128xf32> to vector<1x128xf32>
    %cst_3 = arith.constant 1.250000e-01 : f32
    %10 = vector.broadcast %cst_3 : f32 to vector<1x128xf32>
    %11 = arith.mulf %9, %10 : vector<1x128xf32>
    %cst_4 = arith.constant 9.99999974E-6 : f32
    %12 = vector.broadcast %cst_4 : f32 to vector<1x128xf32>
    %13 = arith.addf %11, %12 : vector<1x128xf32>
    %14 = math.rsqrt %13 : vector<1x128xf32>
    %c0_5 = arith.constant 0 : index
    %c0_6 = arith.constant 0 : index
    %15 = vector.load %arg2[%c0_5, %c0_6] : memref<1x128xf32, #tpu.memory_space<vmem>>, vector<1x128xf32>
    %16 = arith.mulf %14, %15 : vector<1x128xf32>
    %c0_7 = arith.constant 0 : index
    %c0_8 = arith.constant 0 : index
    %17 = vector.load %arg3[%c0_7, %c0_8] : memref<1x128xf32, #tpu.memory_space<vmem>>, vector<1x128xf32>
    %18 = vector.broadcast %4 : vector<1x128xf32> to vector<8x128xf32>
    %19 = arith.subf %0, %18 : vector<8x128xf32>
    %20 = vector.broadcast %16 : vector<1x128xf32> to vector<8x128xf32>
    %21 = arith.mulf %19, %20 : vector<8x128xf32>
    %22 = vector.broadcast %17 : vector<1x128xf32> to vector<8x128xf32>
    %23 = arith.addf %21, %22 : vector<8x128xf32>
    %c0_9 = arith.constant 0 : index
    %c0_10 = arith.constant 0 : index
    %24 = vector.load %arg4[%c0_9, %c0_10] : memref<8x128xf32, #tpu.memory_space<vmem>>, vector<8x128xf32>
    tpu.vector_store %arg4[%c0_9, %c0_10], %23 {strides = array<i32>} : memref<8x128xf32, #tpu.memory_space<vmem>>, vector<8x128xf32>,
    return
  }
  func.func @transform_0(%arg0: i32) -> (i32, i32) {
    %c0_i32 = arith.constant 0 : i32
    %c0_i32_0 = arith.constant 0 : i32
    return %c0_i32, %arg0 : i32, i32
  }
  func.func @transform_1(%arg0: i32) -> (i32, i32) {
    %c0_i32 = arith.constant 0 : i32
    %c0_i32_0 = arith.constant 0 : i32
    return %c0_i32, %arg0 : i32, i32
  }
  func.func @transform_2(%arg0: i32) -> (i32, i32) {
    %c0_i32 = arith.constant 0 : i32
    %c0_i32_0 = arith.constant 0 : i32
    return %c0_i32, %arg0 : i32, i32
  }
  func.func @transform_3(%arg0: i32) -> (i32, i32) {
    %c0_i32 = arith.constant 0 : i32
    %c0_i32_0 = arith.constant 0 : i32
    return %c0_i32, %arg0 : i32, i32
  }
}

</mosaic_0001>

<bundles_post_ra>
// kernel: tpu_custom_call.1
= control target key start
LH: loop header
LB: loop body
LE: loop exit
PB: predicated region body
PF: predicated region fallthrough
CT: control target
= control target key end

     0   :  { %8 = vsyncpa [#allocation3], 0  ;;  %s182_s0 = inlined_call_operand.hbm [shape: f32[8,128], index: 0, kind: input, shape index: {}]   ;;  %s183_s1 = inlined_call_operand.vmem [shape: f32[1,128], index: 1, kind: input, shape index: {}]   ;;  %s184_s2 = inlined_call_operand.vmem [shape: f32[1,128], index: 2, kind: input, shape index: {}]   ;;  %s185_s3 = inlined_call_operand.hbm [shape: f32[8,128], index: 3, kind: output, shape index: {}]  }
   0x1   :  { %9 = vsyncpa [#allocation4], 0  ;;  %s130_s12 = smov [#allocation2]   ;;  %s82_s16 = scalar_lea.hbm %s182_s0, 128 }
   0x2   :  { %s16_s13 = sshll.u32 %s130_s12, 4  ;;  %p83_p0 = scmp.ne.s32.totalorder %s182_s0, %s82_s16  ;;  %s17_s13 = int_to_ptr.vmem [resolvable:$true] %s16_s13 }
   0x3   :  { %p86_p1 = scmp.lt.u32.totalorder %s82_s16, %s182_s0 }
   0x5   :  { %p88_p2 = pnand %p86_p1, %p83_p0 }
   0x7   :  { %91 = shalt.err (!%p88_p2)
}
   0x8   :  { %s92_s21 = scalar_lea.vmem %s17_s13, 128  ;;  %p97_p4 = scmp.lt.s32.totalorder %s17_s13, %s17_s13 }
   0x9   :  { %p93_p3 = scmp.ne.s32.totalorder %s17_s13, %s92_s21  ;;  %p98_p5 = scmp.lt.s32.totalorder %s92_s21, %s92_s21 }
   0xb   :  { %p99_p6 = por %p98_p5, %p97_p4 }
   0xd   :  { %p100_p7 = pnand %p99_p6, %p93_p3 }
   0xf   :  { %103 = shalt.err (!%p100_p7)
}
  0x10   :  { %19 = dma.hbm_to_vmem [thread:$0]  %s182_s0, 128, %s17_s13, [#allocation3]  }
  0x11   :  { %126 = dma.done.wait [#allocation3], 128  }
  0x12   :  { %127 = vsyncadd [#allocation3], 4294967168  ;;  %v27_v0 = vld [vmem:[#allocation2] sm:$0xff]  ;;  %v49_v18 = vlaneseq  ;;  %s131_s27 = smov [#allocation5]  }
  0x13   :  { %v28_v1 = vrot.slane %v27_v0, 4  ;;  %v46_v20 = vld [vmem:[%s183_s1] sm:$0x1]  ;;  %s68_s28 = sshll.u32 %s131_s27, 4  ;;  %s69_s28 = int_to_ptr.vmem [resolvable:$true] %s68_s28 }
  0x14   :  { %v50_v19 = vshrl.u32 %v49_v18, 7  ;;  %v77_v25 = vld [vmem:[%s184_s2] ss:$0 sm:$0xff]  ;;  %s104_s29 = scalar_lea.vmem %s69_s28, 128  ;;  %p109_p9 = scmp.lt.s32.totalorder %s69_s28, %s69_s28 }
  0x15   :  { %v29_v2 = vadd.f32 %v28_v1, %v27_v0  ;;  %p105_p8 = scmp.ne.s32.totalorder %s69_s28, %s104_s29  ;;  %p110_p10 = scmp.lt.s32.totalorder %s104_s29, %s104_s29 }
  0x16   :  { %v51_v21 = vsub.s32 0, %v50_v19 }
  0x17   :  { %v30_v3 = vrot.slane %v29_v2, 2  ;;  %p111_p11 = por %p110_p10, %p109_p9 }
  0x19   :  { %v31_v4 = vadd.f32 %v30_v3, %v29_v2  ;;  %p112_p12 = pnand %p111_p11, %p105_p8 }
  0x1b   :  { %v32_v5 = vrot.slane %v31_v4, 1 }
  0x1d   :  { %v33_v6 = vadd.f32 %v32_v5, %v31_v4 }
  0x1f   :  { %v34_v7 = vmul.f32 0.125, %v33_v6 }
  0x21   :  { %v35_v8 = vsub.f32 %v27_v0, %v34_v7 }
  0x23   :  { %v36_v9 = vmul.f32 %v35_v8, %v35_v8 }
  0x25   :  { %v37_v10 = vrot.slane %v36_v9, 4 }
  0x27   :  { %v38_v11 = vadd.f32 %v37_v10, %v36_v9 }
  0x29   :  { %v39_v12 = vrot.slane %v38_v11, 2 }
  0x2b   :  { %v40_v13 = vadd.f32 %v39_v12, %v38_v11 }
  0x2d   :  { %v41_v14 = vrot.slane %v40_v13, 1 }
  0x2f   :  { %v42_v15 = vadd.f32 %v41_v14, %v40_v13 }
  0x31   :  { %v43_v16 = vmul.f32 0.125, %v42_v15 }
  0x33   :  { %v44_v17 = vadd.f32 1e-05, %v43_v16 }
  0x35   :  { %80 = vrsqrt.f32 %v44_v17 }
  0x3f   :  { %v81_v22 = vpop.eup %80 }
  0x40   :  { %v47_v23 = vmul.f32 %v81_v22, %v46_v20 }
  0x42   :  { %v52_v24 = vrot.slane %v47_v23, %v51_v21 }
  0x44   :  { %v53_v26 = vmul.f32 %v52_v24, %v35_v8 }
  0x46   :  { %v60_v27 = vadd.f32 %v77_v25, %v53_v26 }
  0x48   :  { %61 = vst [vmem:[#allocation5] sm:$0xff] %v60_v27 }
  0x49   :  { %115 = shalt.err (!%p112_p12)
}
  0x4a   :  { %s116_s4 = scalar_lea.hbm %s185_s3, 128 }
  0x4b   :  { %p117_p13 = scmp.ne.s32.totalorder %s185_s3, %s116_s4  ;;  %p120_p0 = scmp.lt.u32.totalorder %s116_s4, %s185_s3 }
  0x4d   :  { %p122_p1 = pnand %p120_p0, %p117_p13 }
  0x4f   :  { %125 = shalt.err (!%p122_p1)
}
  0x50   :  { %71 = dma.vmem_to_hbm [thread:$0]  %s69_s28, 128, %s185_s3, [#allocation4]  }
  0x51   :  { %128 = dma.done.wait [#allocation4], 128  }
  0x52   :  { %129 = vsyncadd [#allocation4], 4294967168 }
  0x53   :  { %75 = vsyncpa [#allocation3], 1 }
  0x54   :  { %76 = vsyncpa [#allocation4], 1 }

</bundles_post_ra>
